<compile_context>
chip_gen: v5e
topology: v5e:2x2
jax: 0.10.0
libtpu: 0.0.40
codegen_flags: <defaults>
</compile_context>

<pallas_src>
import jax
import jax.numpy as jnp
from jax.experimental import pallas as pl
from jax.experimental.pallas import tpu as pltpu


def _make_lorenz_kernel(sigma, rho, beta):
    sigma = float(sigma)
    rho = float(rho)
    beta = float(beta)

    def lorenz_kernel(state_ref, out_ref):
        # state_ref / out_ref: (3, tile_b) lane-dense tiles.
        # Row 0 = x, row 1 = y, row 2 = z.
        s = state_ref[...]
        x = s[0:1, :]
        y = s[1:2, :]
        z = s[2:3, :]

        out_ref[0:1, :] = sigma * (y - x)
        out_ref[1:2, :] = x * (rho - z) - y
        out_ref[2:3, :] = x * y - beta * z

    return lorenz_kernel


def lorenz_forward(state, action=None, *, sigma=10.0, rho=28.0,
                   beta=8.0 / 3.0, tile_b=2048):
    """Pallas equivalent of LorenzSystem.forward(state, action).

    `action` is kept in the signature for parity with the PyTorch module but
    (as in the reference) is unused, so it is never handed to the kernel.
    """
    del action  # unused, same as the PyTorch module
    B, n_state = state.shape
    assert n_state == 3, "Lorenz system requires n_state == 3"

    # Lane-dense layout: (3, B) with batch on the 128-wide lane axis.
    state_t = state.T  # (3, B)

    # Pad the batch axis up to a multiple of the lane tile.
    bp = pl.cdiv(B, 128) * 128
    tile_b = min(int(tile_b), bp)
    bp = pl.cdiv(bp, tile_b) * tile_b
    if bp != B:
        state_t = jnp.pad(state_t, ((0, 0), (0, bp - B)))

    kernel = _make_lorenz_kernel(sigma, rho, beta)

    out_t = pl.pallas_call(
        kernel,
        out_shape=jax.ShapeDtypeStruct((3, bp), state.dtype),
        grid=(bp // tile_b,),
        in_specs=[pl.BlockSpec((3, tile_b), lambda i: (0, i))],
        out_specs=pl.BlockSpec((3, tile_b), lambda i: (0, i)),
        compiler_params=pltpu.CompilerParams(
            dimension_semantics=("parallel",),
        ),
    )(state_t)

    # Strip batch padding and return in the original (B, 3) layout.
    return out_t[:, :B].T

    # TODO(synk): if this derivative is evaluated inside an integration loop,
    # fuse multiple RK/Euler steps per pallas_call to amortize launch overhead.


def lorenz_ref(state, *, sigma=10.0, rho=28.0, beta=8.0 / 3.0):
    x = state[:, 0:1]
    y = state[:, 1:2]
    z = state[:, 2:3]
    dx = sigma * (y - x)
    dy = x * (rho - z) - y
    dz = x * y - beta * z
    return jnp.concatenate((dx, dy, dz), axis=1)


if __name__ == "__main__":
    properties = {"n_state": 3, "n_control": 1}
    params = {"beta": 8.0 / 3.0, "rho": 28.0, "sigma": 10.0}

    key = jax.random.PRNGKey(0)
    k_state, k_action, k_state2 = jax.random.split(key, 3)

    # Small shape matching the module (B=8): pads to one 128-lane tile.
    B = 8
    state = jax.random.normal(k_state, (B, properties["n_state"]), dtype=jnp.float32)
    action = jax.random.normal(k_action, (B, properties["n_control"]), dtype=jnp.float32)

    out = lorenz_forward(
        state, action,
        sigma=params["sigma"], rho=params["rho"], beta=params["beta"],
    )
    out = jax.block_until_ready(out)
    ref = lorenz_ref(state, sigma=params["sigma"], rho=params["rho"], beta=params["beta"])
    assert out.shape == (B, 3)
    assert jnp.allclose(out, ref, atol=1e-5, rtol=1e-5)

    # Second case exercising multi-tile grid + batch padding (B=300, tile_b=128).
    B2 = 300
    state2 = jax.random.normal(k_state2, (B2, properties["n_state"]), dtype=jnp.float32)
    out2 = lorenz_forward(
        state2, None,
        sigma=params["sigma"], rho=params["rho"], beta=params["beta"], tile_b=128,
    )
    out2 = jax.block_until_ready(out2)
    ref2 = lorenz_ref(state2, sigma=params["sigma"], rho=params["rho"], beta=params["beta"])
    assert out2.shape == (B2, 3)
    assert jnp.allclose(out2, ref2, atol=1e-5, rtol=1e-5)

    print("KERNEL_OK")
</pallas_src>

<mosaic_0001>
module attributes {stable_mosaic.version = 11 : i64} {
  func.func @lorenz_kernel(%arg0: i32, %arg1: memref<3x128xf32, #tpu.memory_space<vmem>>, %arg2: memref<3x128xf32, #tpu.memory_space<vmem>>) attributes {dimension_semantics = [#tpu.dimension_semantics<parallel>], iteration_bounds = array<i64: 1>, scalar_prefetch = 0 : i64, scratch_operands = 0 : i64, tpu.core_type = #tpu.core_type<tc>, window_params = [{transform_indices = @transform_0, window_bounds = array<i64: 3, 128>}, {transform_indices = @transform_1, window_bounds = array<i64: 3, 128>}]} {
    %c0 = arith.constant 0 : index
    %c0_0 = arith.constant 0 : index
    %0 = vector.load %arg1[%c0, %c0_0] : memref<3x128xf32, #tpu.memory_space<vmem>>, vector<3x128xf32>
    %1 = vector.extract_strided_slice %0 {offsets = [0, 0], sizes = [1, 128], strides = [1, 1]} : vector<3x128xf32> to vector<1x128xf32>
    %2 = vector.extract_strided_slice %0 {offsets = [1, 0], sizes = [1, 128], strides = [1, 1]} : vector<3x128xf32> to vector<1x128xf32>
    %3 = vector.extract_strided_slice %0 {offsets = [2, 0], sizes = [1, 128], strides = [1, 1]} : vector<3x128xf32> to vector<1x128xf32>
    %4 = arith.subf %2, %1 : vector<1x128xf32>
    %cst = arith.constant 1.000000e+01 : f32
    %5 = vector.broadcast %cst : f32 to vector<1x128xf32>
    %6 = arith.mulf %5, %4 : vector<1x128xf32>
    %c0_1 = arith.constant 0 : index
    %c0_2 = arith.constant 0 : index
    %7 = vector.load %arg2[%c0_1, %c0_2] : memref<3x128xf32, #tpu.memory_space<vmem>>, vector<1x128xf32>
    tpu.vector_store %arg2[%c0_1, %c0_2], %6 {strides = array<i32>} : memref<3x128xf32, #tpu.memory_space<vmem>>, vector<1x128xf32>,
    %cst_3 = arith.constant 2.800000e+01 : f32
    %8 = vector.broadcast %cst_3 : f32 to vector<1x128xf32>
    %9 = arith.subf %8, %3 : vector<1x128xf32>
    %10 = arith.mulf %1, %9 : vector<1x128xf32>
    %11 = arith.subf %10, %2 : vector<1x128xf32>
    %c1 = arith.constant 1 : index
    %c0_4 = arith.constant 0 : index
    %12 = vector.load %arg2[%c1, %c0_4] : memref<3x128xf32, #tpu.memory_space<vmem>>, vector<1x128xf32>
    tpu.vector_store %arg2[%c1, %c0_4], %11 {strides = array<i32>} : memref<3x128xf32, #tpu.memory_space<vmem>>, vector<1x128xf32>,
    %13 = arith.mulf %1, %2 : vector<1x128xf32>
    %cst_5 = arith.constant 2.66666675 : f32
    %14 = vector.broadcast %cst_5 : f32 to vector<1x128xf32>
    %15 = arith.mulf %14, %3 : vector<1x128xf32>
    %16 = arith.subf %13, %15 : vector<1x128xf32>
    %c2 = arith.constant 2 : index
    %c0_6 = arith.constant 0 : index
    %17 = vector.load %arg2[%c2, %c0_6] : memref<3x128xf32, #tpu.memory_space<vmem>>, vector<1x128xf32>
    tpu.vector_store %arg2[%c2, %c0_6], %16 {strides = array<i32>} : memref<3x128xf32, #tpu.memory_space<vmem>>, vector<1x128xf32>,
    return
  }
  func.func @transform_0(%arg0: i32) -> (i32, i32) {
    %c0_i32 = arith.constant 0 : i32
    %c0_i32_0 = arith.constant 0 : i32
    return %c0_i32, %arg0 : i32, i32
  }
  func.func @transform_1(%arg0: i32) -> (i32, i32) {
    %c0_i32 = arith.constant 0 : i32
    %c0_i32_0 = arith.constant 0 : i32
    return %c0_i32, %arg0 : i32, i32
  }
}

</mosaic_0001>

<bundles_post_ra>
// kernel: tpu_custom_call.1
= control target key start
LH: loop header
LB: loop body
LE: loop exit
PB: predicated region body
PF: predicated region fallthrough
CT: control target
= control target key end

     0   :  { %6 = vsyncpa [#allocation3], 0  ;;  %s135_s0 = inlined_call_operand.hbm [shape: f32[3,128], index: 0, kind: input, shape index: {}]   ;;  %s136_s1 = inlined_call_operand.hbm [shape: f32[3,128], index: 1, kind: output, shape index: {}]  }
   0x1   :  { %7 = vsyncpa [#allocation4], 0  ;;  %s13_s8 = sshll.u32 %s135_s0, 4  ;;  %s117_s9 = smov [#allocation2]   ;;  %s14_s8 = int_to_ptr.hbm [resolvable:$true] %s13_s8 }
   0x2   :  { %s15_s10 = sshll.u32 %s117_s9, 4  ;;  %s16_s10 = int_to_ptr.vmem [resolvable:$true] %s15_s10 }
   0x3   :  { %18 = dma.hbm_to_vmem [thread:$0]  %s14_s8, 64, %s16_s10, [#allocation3]  }
   0x4   :  { %113 = dma.done.wait [#allocation3], 64  }
   0x5   :  { %114 = vsyncadd [#allocation3], 4294967232  ;;  %v23_v0 = vld [vmem:[#allocation2] sm:$0x7]  ;;  %s118_s11 = smov [#allocation5]   ;;  %s53_s14 = sshll.u32 %s136_s1, 4  ;;  %s54_s14 = int_to_ptr.hbm [resolvable:$true] %s53_s14 }
   0x6   :  { %v25_v1 = vrot.slane %v23_v0, 7  ;;  %v30_v2 = vsub.f32 28.0, %v23_v0  ;;  %v35_v3 = vrot.slane %v23_v0, 1  ;;  %v40_v4 = vmul.f32 2.6666667, %v23_v0  ;;  %s51_s12 = sshll.u32 %s118_s11, 4  ;;  %s52_s12 = int_to_ptr.vmem [resolvable:$true] %s51_s12 }
   0x8   :  { %v27_v5 = vsub.f32 %v23_v0, %v25_v1  ;;  %v32_v6 = vrot.slane %v30_v2, 2  ;;  %v39_v7 = vmul.f32 %v35_v3, %v23_v0  ;;  %v42_v8 = vrot.slane %v40_v4, 2 }
   0xa   :  { %v28_v9 = vmul.f32 10.0, %v27_v5  ;;  %v34_v10 = vmul.f32 %v32_v6, %v23_v0  ;;  %v44_v11 = vsub.f32 %v39_v7, %v42_v8 }
   0xc   :  { %29 = vst [vmem:[#allocation5 - $0x1] sm:$0x2] %v28_v9  ;;  %v37_v12 = vsub.f32 %v34_v10, %v35_v3 }
   0xd   :  { %45 = vst [vmem:[#allocation5 + $0x2] sm:$0x1] %v44_v11 }
   0xe   :  { %38 = vst [vmem:[#allocation5 + $0x1] sm:$0x1] %v37_v12 }
   0xf   :  { %56 = dma.vmem_to_hbm [thread:$0]  %s52_s12, 64, %s54_s14, [#allocation4]  }
  0x10   :  { %115 = dma.done.wait [#allocation4], 64  }
  0x11   :  { %116 = vsyncadd [#allocation4], 4294967232 }
  0x12   :  { %61 = vsyncpa [#allocation3], 1 }
  0x13   :  { %62 = vsyncpa [#allocation4], 1 }

</bundles_post_ra>
